<compile_context>
chip_gen: v6e
topology: v6e:2x2x1
jax: 0.10.0
libtpu: 0.0.40
codegen_flags: <defaults>
</compile_context>

<pallas_src>
import functools

import numpy as np
import jax
import jax.numpy as jnp
from jax import lax
from jax.experimental import pallas as pl
from jax.experimental.pallas import tpu as pltpu


# ----------------------------- helpers ---------------------------------------
def _round_up(x, m):
    return ((x + m - 1) // m) * m


def _hann_window_np(win_length):
    # torch.hann_window default is periodic: 0.5 - 0.5*cos(2*pi*n/N)
    n = np.arange(win_length, dtype=np.float64)
    return 0.5 - 0.5 * np.cos(2.0 * np.pi * n / win_length)


def _build_windowed_basis(n_fft, win_length, n_freq_pad):
    """One-sided DFT basis with the centered Hann window folded in.

    Shape [n_fft, 2*n_freq_pad]: cols [0, n_freq) = win*cos, cols
    [n_freq_pad, n_freq_pad+n_freq) = win*sin, remaining lanes zero so the
    matmul output is lane-dense (multiple of 128)."""
    n_freq = n_fft // 2 + 1
    n = np.arange(n_fft, dtype=np.float64)[:, None]
    k = np.arange(n_freq, dtype=np.float64)[None, :]
    ang = 2.0 * np.pi * n * k / n_fft
    win = _hann_window_np(win_length)
    lpad = (n_fft - win_length) // 2
    win = np.pad(win, (lpad, n_fft - win_length - lpad))
    basis = np.zeros((n_fft, 2 * n_freq_pad), dtype=np.float32)
    basis[:, :n_freq] = (np.cos(ang) * win[:, None]).astype(np.float32)
    basis[:, n_freq_pad:n_freq_pad + n_freq] = (np.sin(ang) * win[:, None]).astype(np.float32)
    return basis


# ----------------------------- Pallas kernel ---------------------------------
def _stft_loss_kernel(f_ref, basis_ref, mag_ref, sqd_ref, sq_ref, *,
                      n_freq, n_frames_valid):
    p = pl.program_id(0)          # 2-way frame split ("parallel" -> 2 TCs on v7x)
    i = pl.program_id(1)          # reduction over frame tiles ("arbitrary")
    steps = pl.num_programs(1)
    _, tile, n_fft = f_ref.shape
    n_freq_pad = basis_ref.shape[1] // 2

    @pl.when(i == 0)
    def _():
        mag_ref[...] = jnp.zeros_like(mag_ref)
        sqd_ref[...] = jnp.zeros_like(sqd_ref)
        sq_ref[...] = jnp.zeros_like(sq_ref)

    # Single fused MXU matmul for both signals: rows [0:tile] are y_hat frames,
    # rows [tile:2*tile] are y frames; the basis is pushed once per step.
    lhs = f_ref[...].reshape(2 * tile, n_fft)                 # bf16, free reshape
    mm = jnp.dot(lhs, basis_ref[...], preferred_element_type=jnp.float32)
    re = mm[:, :n_freq_pad]
    im = mm[:, n_freq_pad:]
    e = jnp.maximum(re * re + im * im, 1e-8)                  # |STFT|^2, clamped
    e_hat = e[:tile]
    e_y = e[tile:]

    # validity mask: real frequency bins AND real (non clamp-duplicated) frames
    col = lax.broadcasted_iota(jnp.int32, (tile, n_freq_pad), 1)
    row = lax.broadcasted_iota(jnp.int32, (tile, n_freq_pad), 0)
    row_g = (p * steps + i) * tile + row
    mask = ((col < n_freq) & (row_g < n_frames_valid)).astype(jnp.float32)

    # |log s_y - log s_hat| = 0.5*|log e_y - log e_hat|  (exact, two EUP logs)
    mag_t = (0.5 * mask) * jnp.abs(jnp.log(e_y) - jnp.log(e_hat))
    # (s_y - s_hat)^2 = e_y + e_hat - 2*sqrt(e_y*e_hat)   (one EUP sqrt)
    sqd_t = mask * jnp.maximum(e_y + e_hat - 2.0 * jnp.sqrt(e_y * e_hat), 0.0)
    sq_t = mask * e_y                                         # ||y_M||_F^2 terms

    # sublane-reduce per step, accumulate into the resident output refs.
    mag_ref[...] += jnp.sum(mag_t, axis=0, keepdims=True)[None]
    sqd_ref[...] += jnp.sum(sqd_t, axis=0, keepdims=True)[None]
    sq_ref[...] += jnp.sum(sq_t, axis=0, keepdims=True)[None]


# ----------------------------- wrapper ----------------------------------------
class STFTLossCustom:
    """JAX/Pallas port of STFTLoss_custom.forward (forward pass only)."""

    def __init__(self, n_fft, hop_length, win_length, tile_frames=512):
        assert tile_frames % 16 == 0 and tile_frames >= 16
        self.n_fft = n_fft
        self.hop_length = hop_length
        self.win_length = win_length
        self.tile_frames = tile_frames
        self.n_freq = n_fft // 2 + 1
        self.n_freq_pad = _round_up(self.n_freq, 128)
        basis = _build_windowed_basis(n_fft, win_length, self.n_freq_pad)
        # bf16 operands feed the MXU natively; accumulation and all
        # elementwise math stay f32.
        self.basis = jnp.asarray(basis, dtype=jnp.bfloat16)

    def __call__(self, y_hat, y):
        if y_hat.ndim == 3:
            y_hat = y_hat[:, 0, :]
        if y.ndim == 3:
            y = y[:, 0, :]
        B, T = y.shape
        n_frames = 1 + T // self.hop_length
        N = B * n_frames                      # real frames per signal

        # --- tile / grid sizing -------------------------------------------------
        half = -(-N // 2)
        tile = max(16, min(self.tile_frames, _round_up(half, 16)))
        steps = max(1, -(-N // (2 * tile)))
        n_pad = 2 * steps * tile

        # --- framing: one gather, bf16, padding folded into clamped indices ----
        x = jnp.concatenate([y_hat, y], axis=0)               # (2B, T), tiny
        pad = self.n_fft // 2
        xp = jnp.pad(x, ((0, 0), (pad, pad)), mode="reflect").astype(jnp.bfloat16)
        xp3 = xp.reshape(2, B, -1)                             # (2, B, T+2*pad)

        r = np.arange(n_pad)
        r_c = np.minimum(r, N - 1)                             # clamp tail rows
        b_idx = (r_c // n_frames).astype(np.int32)
        start = (r_c % n_frames).astype(np.int32) * self.hop_length
        col = (start[:, None] + np.arange(self.n_fft, dtype=np.int32)[None, :])
        frames = xp3[:, b_idx[:, None], col]                   # (2, n_pad, n_fft) bf16

        # --- VMEM budget (only raise the scoped limit when actually needed) ----
        in_block = 2 * tile * self.n_fft * 2                   # bf16 frames per step
        basis_b = self.n_fft * 2 * self.n_freq_pad * 2         # bf16 basis
        out_b = 3 * self.n_freq_pad * 4
        est_vmem = 2 * in_block + 2 * basis_b + 2 * out_b + (1 << 20)
        cp_kwargs = dict(dimension_semantics=("parallel", "arbitrary"))
        if est_vmem > 12 * 1024 * 1024:
            cp_kwargs["vmem_limit_bytes"] = int(min(64 * 1024 * 1024, 2 * est_vmem))

        kernel = functools.partial(_stft_loss_kernel,
                                   n_freq=self.n_freq, n_frames_valid=N)

        out_sds = jax.ShapeDtypeStruct((2, 1, self.n_freq_pad), jnp.float32)
        out_spec = pl.BlockSpec((1, 1, self.n_freq_pad), lambda p, i: (p, 0, 0))

        grid_spec = pltpu.PrefetchScalarGridSpec(
            num_scalar_prefetch=0,
            grid=(2, steps),
            in_specs=[
                pl.BlockSpec((2, tile, self.n_fft),
                             lambda p, i: (0, p * steps + i, 0)),
                pl.BlockSpec((self.n_fft, 2 * self.n_freq_pad),
                             lambda p, i: (0, 0)),
            ],
            out_specs=[out_spec, out_spec, out_spec],
        )

        mag, sqd, sq = pl.pallas_call(
            kernel,
            out_shape=[out_sds, out_sds, out_sds],
            grid_spec=grid_spec,
            compiler_params=pltpu.CompilerParams(**cp_kwargs),
        )(frames, self.basis)

        # padded lanes / padded frames are masked to exactly 0 in-kernel, so the
        # tiny (2,1,n_freq_pad) partials can be summed directly.
        loss_mag = jnp.sum(mag) / jnp.float32(N * self.n_freq)     # F.l1_loss mean
        loss_sc = jnp.sqrt(jnp.sum(sqd)) / jnp.sqrt(jnp.sum(sq))   # ||yM-yhatM||_F/||yM||_F
        return loss_mag, loss_sc


# ----------------------------- reference (pure JAX, f32) ----------------------
def _frame_f32(x, n_fft, hop_length):
    if x.ndim == 3:
        x = x[:, 0, :]
    B, T = x.shape
    pad = n_fft // 2
    xp = jnp.pad(x, ((0, 0), (pad, pad)), mode="reflect")
    n_frames = 1 + T // hop_length
    idx = (np.arange(n_frames) * hop_length)[:, None] + np.arange(n_fft)[None, :]
    return xp[:, idx].reshape(B * n_frames, n_fft)


def _reference_loss(y_hat, y, n_fft, hop_length, win_length):
    n = jnp.arange(win_length, dtype=jnp.float32)
    win = 0.5 - 0.5 * jnp.cos(2.0 * jnp.pi * n / win_length)
    lpad = (n_fft - win_length) // 2
    win = jnp.pad(win, (lpad, n_fft - win_length - lpad))

    def spec(x):
        fr = _frame_f32(x, n_fft, hop_length) * win[None, :]
        F = jnp.fft.rfft(fr, n=n_fft, axis=-1)
        return jnp.sqrt(jnp.maximum(jnp.real(F) ** 2 + jnp.imag(F) ** 2, 1e-8))

    s_hat, s_y = spec(y_hat), spec(y)
    loss_mag = jnp.mean(jnp.abs(jnp.log(s_y) - jnp.log(s_hat)))
    loss_sc = jnp.linalg.norm(s_y - s_hat) / jnp.linalg.norm(s_y)
    return loss_mag, loss_sc


# ----------------------------- main -------------------------------------------
if __name__ == "__main__":
    n_fft, hop_length, win_length = 128, 32, 128
    B, T = 2, 224  # -> 1 + 224//32 = 8 frames per item, 16 frames per signal

    key = jax.random.PRNGKey(0)
    k1, k2 = jax.random.split(key)
    y_hat = jax.random.normal(k1, (B, T), dtype=jnp.float32)
    y = jax.random.normal(k2, (B, T), dtype=jnp.float32)

    loss_fn = STFTLossCustom(n_fft, hop_length, win_length)
    loss_mag, loss_sc = loss_fn(y_hat, y)
    loss_mag, loss_sc = jax.block_until_ready((loss_mag, loss_sc))

    ref_mag, ref_sc = _reference_loss(y_hat, y, n_fft, hop_length, win_length)
    # bf16 MXU operands -> slightly looser tolerance than pure f32
    np.testing.assert_allclose(np.asarray(loss_mag), np.asarray(ref_mag),
                               rtol=2e-2, atol=5e-3)
    np.testing.assert_allclose(np.asarray(loss_sc), np.asarray(ref_sc),
                               rtol=2e-2, atol=5e-3)

    print("KERNEL_OK")
</pallas_src>

<mosaic_0001>
module attributes {stable_mosaic.version = 11 : i64} {
  func.func @_stft_loss_kernel(%arg0: i32, %arg1: i32, %arg2: memref<2x16x128xbf16, #tpu.memory_space<vmem>>, %arg3: memref<128x256xbf16, #tpu.memory_space<vmem>>, %arg4: memref<1x1x128xf32, #tpu.memory_space<vmem>>, %arg5: memref<1x1x128xf32, #tpu.memory_space<vmem>>, %arg6: memref<1x1x128xf32, #tpu.memory_space<vmem>>) attributes {dimension_semantics = [#tpu.dimension_semantics<parallel>, #tpu.dimension_semantics<arbitrary>], iteration_bounds = array<i64: 2, 1>, scalar_prefetch = 0 : i64, scratch_operands = 0 : i64, tpu.core_type = #tpu.core_type<tc>, window_params = [{transform_indices = @transform_0, window_bounds = array<i64: 2, 16, 128>}, {pipeline_mode = #tpu.pipeline_mode<synchronous>, transform_indices = @transform_1, window_bounds = array<i64: 128, 256>}, {transform_indices = @transform_2, window_bounds = array<i64: 1, 1, 128>}, {transform_indices = @transform_3, window_bounds = array<i64: 1, 1, 128>}, {transform_indices = @transform_4, window_bounds = array<i64: 1, 1, 128>}]} {
    %c0_i32 = arith.constant 0 : i32
    %0 = arith.cmpi eq, %arg1, %c0_i32 : i32
    %1 = arith.extui %0 : i1 to i32
    %c0_i32_0 = arith.constant 0 : i32
    %2 = arith.cmpi ne, %1, %c0_i32_0 : i32
    scf.if %2 {
      %cst_31 = arith.constant 0.000000e+00 : f32
      %65 = vector.broadcast %cst_31 : f32 to vector<1x1x128xf32>
      %c0_32 = arith.constant 0 : index
      %c0_33 = arith.constant 0 : index
      %c0_34 = arith.constant 0 : index
      %66 = vector.load %arg4[%c0_32, %c0_33, %c0_34] : memref<1x1x128xf32, #tpu.memory_space<vmem>>, vector<1x1x128xf32>
      tpu.vector_store %arg4[%c0_32, %c0_33, %c0_34], %65 {strides = array<i32>} : memref<1x1x128xf32, #tpu.memory_space<vmem>>, vector<1x1x128xf32>,
      %cst_35 = arith.constant 0.000000e+00 : f32
      %67 = vector.broadcast %cst_35 : f32 to vector<1x1x128xf32>
      %c0_36 = arith.constant 0 : index
      %c0_37 = arith.constant 0 : index
      %c0_38 = arith.constant 0 : index
      %68 = vector.load %arg5[%c0_36, %c0_37, %c0_38] : memref<1x1x128xf32, #tpu.memory_space<vmem>>, vector<1x1x128xf32>
      tpu.vector_store %arg5[%c0_36, %c0_37, %c0_38], %67 {strides = array<i32>} : memref<1x1x128xf32, #tpu.memory_space<vmem>>, vector<1x1x128xf32>,
      %cst_39 = arith.constant 0.000000e+00 : f32
      %69 = vector.broadcast %cst_39 : f32 to vector<1x1x128xf32>
      %c0_40 = arith.constant 0 : index
      %c0_41 = arith.constant 0 : index
      %c0_42 = arith.constant 0 : index
      %70 = vector.load %arg6[%c0_40, %c0_41, %c0_42] : memref<1x1x128xf32, #tpu.memory_space<vmem>>, vector<1x1x128xf32>
      tpu.vector_store %arg6[%c0_40, %c0_41, %c0_42], %69 {strides = array<i32>} : memref<1x1x128xf32, #tpu.memory_space<vmem>>, vector<1x1x128xf32>,
    } else {
    }
    %c0 = arith.constant 0 : index
    %c0_1 = arith.constant 0 : index
    %c0_2 = arith.constant 0 : index
    %3 = vector.load %arg2[%c0, %c0_1, %c0_2] : memref<2x16x128xbf16, #tpu.memory_space<vmem>>, vector<2x16x128xbf16>
    %4 = vector.shape_cast %3 : vector<2x16x128xbf16> to vector<32x128xbf16>
    %c0_3 = arith.constant 0 : index
    %c0_4 = arith.constant 0 : index
    %5 = vector.load %arg3[%c0_3, %c0_4] : memref<128x256xbf16, #tpu.memory_space<vmem>>, vector<128x256xbf16>
    %cst = arith.constant dense<0.000000e+00> : vector<32x256xf32>
    %6 = tpu.matmul %4, %5, %cst {dimension_numbers = #tpu.dot_dimension_numbers<[1], [0], [0], [1], [0, 0, 1, 1], [], []>} : vector<32x128xbf16>, vector<128x256xbf16>, vector<32x256xf32> -> vector<32x256xf32>
    %7 = vector.extract_strided_slice %6 {offsets = [0, 0], sizes = [32, 128], strides = [1, 1]} : vector<32x256xf32> to vector<32x128xf32>
    %8 = vector.extract_strided_slice %6 {offsets = [0, 128], sizes = [32, 128], strides = [1, 1]} : vector<32x256xf32> to vector<32x128xf32>
    %9 = arith.mulf %7, %7 : vector<32x128xf32>
    %10 = arith.mulf %8, %8 : vector<32x128xf32>
    %11 = arith.addf %9, %10 : vector<32x128xf32>
    %cst_5 = arith.constant 9.99999993E-9 : f32
    %12 = vector.broadcast %cst_5 : f32 to vector<32x128xf32>
    %13 = arith.maximumf %11, %12 : vector<32x128xf32>
    %14 = vector.extract_strided_slice %13 {offsets = [0, 0], sizes = [16, 128], strides = [1, 1]} : vector<32x128xf32> to vector<16x128xf32>
    %15 = vector.extract_strided_slice %13 {offsets = [16, 0], sizes = [16, 128], strides = [1, 1]} : vector<32x128xf32> to vector<16x128xf32>
    %16 = tpu.iota {dimensions = array<i32: 1>} : vector<16x128xi32>
    %17 = tpu.iota {dimensions = array<i32: 0>} : vector<16x128xi32>
    %c1_i32 = arith.constant 1 : i32
    %18 = arith.muli %arg0, %c1_i32 : i32
    %19 = arith.addi %18, %arg1 : i32
    %c16_i32 = arith.constant 16 : i32
    %20 = arith.muli %19, %c16_i32 : i32
    %21 = vector.broadcast %20 : i32 to vector<16x128xi32>
    %22 = arith.addi %21, %17 : vector<16x128xi32>
    %c65_i32 = arith.constant 65 : i32
    %23 = vector.broadcast %c65_i32 : i32 to vector<16x128xi32>
    %24 = arith.cmpi slt, %16, %23 : vector<16x128xi32>
    %c16_i32_6 = arith.constant 16 : i32
    %25 = vector.broadcast %c16_i32_6 : i32 to vector<16x128xi32>
    %26 = arith.cmpi slt, %22, %25 : vector<16x128xi32>
    %27 = arith.andi %24, %26 : vector<16x128xi1>
    %28 = arith.extui %27 : vector<16x128xi1> to vector<16x128xi32>
    %29 = arith.sitofp %28 : vector<16x128xi32> to vector<16x128xf32>
    %cst_7 = arith.constant 5.000000e-01 : f32
    %30 = vector.broadcast %cst_7 : f32 to vector<16x128xf32>
    %31 = arith.mulf %30, %29 : vector<16x128xf32>
    %32 = math.log %15 : vector<16x128xf32>
    %33 = math.log %14 : vector<16x128xf32>
    %34 = arith.subf %32, %33 : vector<16x128xf32>
    %35 = math.absf %34 : vector<16x128xf32>
    %36 = arith.mulf %31, %35 : vector<16x128xf32>
    %37 = arith.addf %15, %14 : vector<16x128xf32>
    %38 = arith.mulf %15, %14 : vector<16x128xf32>
    %39 = math.sqrt %38 : vector<16x128xf32>
    %cst_8 = arith.constant 2.000000e+00 : f32
    %40 = vector.broadcast %cst_8 : f32 to vector<16x128xf32>
    %41 = arith.mulf %40, %39 : vector<16x128xf32>
    %42 = arith.subf %37, %41 : vector<16x128xf32>
    %cst_9 = arith.constant 0.000000e+00 : f32
    %43 = vector.broadcast %cst_9 : f32 to vector<16x128xf32>
    %44 = arith.maximumf %42, %43 : vector<16x128xf32>
    %45 = arith.mulf %29, %44 : vector<16x128xf32>
    %46 = arith.mulf %29, %15 : vector<16x128xf32>
    %c0_10 = arith.constant 0 : index
    %c0_11 = arith.constant 0 : index
    %c0_12 = arith.constant 0 : index
    %47 = vector.load %arg4[%c0_10, %c0_11, %c0_12] : memref<1x1x128xf32, #tpu.memory_space<vmem>>, vector<1x1x128xf32>
    %cst_13 = arith.constant dense<0.000000e+00> : vector<128xf32>
    %48 = vector.multi_reduction <add>, %36, %cst_13 [0] : vector<16x128xf32> to vector<128xf32>
    %49 = vector.shape_cast %48 : vector<128xf32> to vector<1x128xf32>
    %50 = vector.shape_cast %49 : vector<1x128xf32> to vector<1x1x128xf32>
    %51 = arith.addf %47, %50 : vector<1x1x128xf32>
    %c0_14 = arith.constant 0 : index
    %c0_15 = arith.constant 0 : index
    %c0_16 = arith.constant 0 : index
    %52 = vector.load %arg4[%c0_14, %c0_15, %c0_16] : memref<1x1x128xf32, #tpu.memory_space<vmem>>, vector<1x1x128xf32>
    tpu.vector_store %arg4[%c0_14, %c0_15, %c0_16], %51 {strides = array<i32>} : memref<1x1x128xf32, #tpu.memory_space<vmem>>, vector<1x1x128xf32>,
    %c0_17 = arith.constant 0 : index
    %c0_18 = arith.constant 0 : index
    %c0_19 = arith.constant 0 : index
    %53 = vector.load %arg5[%c0_17, %c0_18, %c0_19] : memref<1x1x128xf32, #tpu.memory_space<vmem>>, vector<1x1x128xf32>
    %cst_20 = arith.constant dense<0.000000e+00> : vector<128xf32>
    %54 = vector.multi_reduction <add>, %45, %cst_20 [0] : vector<16x128xf32> to vector<128xf32>
    %55 = vector.shape_cast %54 : vector<128xf32> to vector<1x128xf32>
    %56 = vector.shape_cast %55 : vector<1x128xf32> to vector<1x1x128xf32>
    %57 = arith.addf %53, %56 : vector<1x1x128xf32>
    %c0_21 = arith.constant 0 : index
    %c0_22 = arith.constant 0 : index
    %c0_23 = arith.constant 0 : index
    %58 = vector.load %arg5[%c0_21, %c0_22, %c0_23] : memref<1x1x128xf32, #tpu.memory_space<vmem>>, vector<1x1x128xf32>
    tpu.vector_store %arg5[%c0_21, %c0_22, %c0_23], %57 {strides = array<i32>} : memref<1x1x128xf32, #tpu.memory_space<vmem>>, vector<1x1x128xf32>,
    %c0_24 = arith.constant 0 : index
    %c0_25 = arith.constant 0 : index
    %c0_26 = arith.constant 0 : index
    %59 = vector.load %arg6[%c0_24, %c0_25, %c0_26] : memref<1x1x128xf32, #tpu.memory_space<vmem>>, vector<1x1x128xf32>
    %cst_27 = arith.constant dense<0.000000e+00> : vector<128xf32>
    %60 = vector.multi_reduction <add>, %46, %cst_27 [0] : vector<16x128xf32> to vector<128xf32>
    %61 = vector.shape_cast %60 : vector<128xf32> to vector<1x128xf32>
    %62 = vector.shape_cast %61 : vector<1x128xf32> to vector<1x1x128xf32>
    %63 = arith.addf %59, %62 : vector<1x1x128xf32>
    %c0_28 = arith.constant 0 : index
    %c0_29 = arith.constant 0 : index
    %c0_30 = arith.constant 0 : index
    %64 = vector.load %arg6[%c0_28, %c0_29, %c0_30] : memref<1x1x128xf32, #tpu.memory_space<vmem>>, vector<1x1x128xf32>
    tpu.vector_store %arg6[%c0_28, %c0_29, %c0_30], %63 {strides = array<i32>} : memref<1x1x128xf32, #tpu.memory_space<vmem>>, vector<1x1x128xf32>,
    return
  }
  func.func @transform_0(%arg0: i32, %arg1: i32) -> (i32, i32, i32) {
    %c1_i32 = arith.constant 1 : i32
    %0 = arith.muli %arg0, %c1_i32 : i32
    %1 = arith.addi %0, %arg1 : i32
    %c0_i32 = arith.constant 0 : i32
    %c0_i32_0 = arith.constant 0 : i32
    %c0_i32_1 = arith.constant 0 : i32
    return %c0_i32, %1, %c0_i32_0 : i32, i32, i32
  }
  func.func @transform_1(%arg0: i32, %arg1: i32) -> (i32, i32) {
    %c0_i32 = arith.constant 0 : i32
    %c0_i32_0 = arith.constant 0 : i32
    %c0_i32_1 = arith.constant 0 : i32
    return %c0_i32, %c0_i32_0 : i32, i32
  }
  func.func @transform_2(%arg0: i32, %arg1: i32) -> (i32, i32, i32) {
    %c0_i32 = arith.constant 0 : i32
    %c0_i32_0 = arith.constant 0 : i32
    %c0_i32_1 = arith.constant 0 : i32
    return %arg0, %c0_i32, %c0_i32_0 : i32, i32, i32
  }
  func.func @transform_3(%arg0: i32, %arg1: i32) -> (i32, i32, i32) {
    %c0_i32 = arith.constant 0 : i32
    %c0_i32_0 = arith.constant 0 : i32
    %c0_i32_1 = arith.constant 0 : i32
    return %arg0, %c0_i32, %c0_i32_0 : i32, i32, i32
  }
  func.func @transform_4(%arg0: i32, %arg1: i32) -> (i32, i32, i32) {
    %c0_i32 = arith.constant 0 : i32
    %c0_i32_0 = arith.constant 0 : i32
    %c0_i32_1 = arith.constant 0 : i32
    return %arg0, %c0_i32, %c0_i32_0 : i32, i32, i32
  }
}

</mosaic_0001>

<bundles_post_ra>
// kernel: tpu_custom_call.1
= control target key start
LH: loop header
LB: loop body
LE: loop exit
PB: predicated region body
PF: predicated region fallthrough
CT: control target
= control target key end

     0   :  { %s1423_s0 = inlined_call_operand.hbm [shape: bf16[2,32,128], index: 0, kind: input, shape index: {}]   ;;  %s1424_s1 = inlined_call_operand.hbm [shape: bf16[128,256], index: 1, kind: input, shape index: {}]   ;;  %s1425_s2 = inlined_call_operand.hbm [shape: f32[2,1,128], index: 2, kind: output, shape index: {0}]   ;;  %s1426_s3 = inlined_call_operand.hbm [shape: f32[2,1,128], index: 3, kind: output, shape index: {1}]   ;;  %s1427_s4 = inlined_call_operand.hbm [shape: f32[2,1,128], index: 4, kind: output, shape index: {2}]  }
   0x1   :  { %1432 = sst [smem:[#allocation19_spill]] %s1424_s1 }
   0x2   :  { %10 = vsyncpa [#allocation3], 0 }
   0x3   :  { %12 = vsyncpa [#allocation3 + $0x1], 0 }
   0x4   :  { %13 = vsyncpa [#allocation6], 0 }
   0x5   :  { %14 = vsyncpa [#allocation4], 0 }
   0x6   :  { %16 = vsyncpa [#allocation4 + $0x1], 0 }
   0x7   :  { %17 = vsyncpa [#allocation9], 0 }
   0x8   :  { %19 = vsyncpa [#allocation9 + $0x1], 0  ;;  %s1151_s15 = smov 0   ;;  %s1153_s16 = smov 0  }
   0x9   :  { %s1155_s17 = smov 0   ;;  %s1157_s18 = smov 0  }
   0xa   :  { %s1159_s19 = smov 0   ;;  %s1161_s20 = smov 0  }
   0xb LB: > { %s1182_s21 = sadd.s32 4294967295, %s1110_s20   ;;  %s1430_s22 = sadd.s32 4294967294, %s1110_s20   ;;  %s1110_s20 = sphi %s1161_s20, %s25_s20   ;;  %s1106_s19 = sphi %s1159_s19, %s1449_s19   ;;  %s1102_s18 = sphi %s1157_s18, %s1448_s18   ;;  %s1098_s17 = sphi %s1155_s17, %s1447_s17   ;;  %s1094_s16 = sphi %s1153_s16, %s1446_s16   ;;  %s1090_s15 = sphi %s1151_s15, %s1445_s15  }
   0xc   : > { %s37_s23 = sadd.s32 1, %s1106_s19  ;;  %s46_s24 = sadd.s32 1, %s1098_s17 }
   0xd   : > { %p39_p0 = scmp.ge.s32.totalorder %s37_s23, 2  ;;  %p53_p1 = scmp.ne.s32.totalorder %s1098_s17, %s1094_s16 }
   0xe   : > { %p54_p2 = scmp.eq.s32.totalorder %s1110_s20, 0  ;;  %p59_p3 = scmp.ne.s32.totalorder %s1094_s16, %s1090_s15 }
   0xf   : > { %s1451_s23 = smov (%p39_p0, %s37_s23), 0  ;;  %p60_p5 = scmp.eq.s32.totalorder %s1182_s21, 0 }
  0x10   : > { %1433 = sst [smem:[#allocation18_spill]] %s1451_s23  ;;  %p1194_p4 = por %p54_p2, %p53_p1 }
  0x11   : > { %s43_s26 = ssub.s32 %s1106_s19, %s1451_s23  ;;  %p104_p6 = scmp.eq.s32.totalorder %s1182_s21, 1 }
  0x12   : > { %p44_p7 = scmp.eq.s32.totalorder %s43_s26, 0  ;;  %p1204_p8 = por %p60_p5, %p59_p3 }
  0x13   : > { %p1208_p9 = por %p104_p6, %p53_p1  ;;  %p110_p10 = scmp.eq.s32.totalorder %s1430_s22, 1 }
  0x14   : > { %s1435_s27 = scalar_select %p1204_p8, 1, 0 }
  0x15   : > { %s1436_s28 = scalar_select %p1208_p9, 1, 0 }
  0x16   : > { %s1215_s29 = scalar_select %p44_p7, %s1098_s17, %s46_s24  }
  0x17   : > { %p1217_p11 = por %p110_p10, %p59_p3  ;;  %p757_p12 = scmp.ge.s32.totalorder %s1110_s20, 1 }
  0x18   : > { %p169_p13 = scmp.lt.s32.totalorder %s1110_s20, 3  ;;  %s1112_s6 = smov [#allocation5]  }
  0x19   : > { %s1437_s30 = scalar_select %p1217_p11, 1, 0 }
  0x1a   : > { %p1223_p0 = pnand %p757_p12, %p169_p13  ;;  %s181_s7 = sshll.u32 %s1112_s6, 4  ;;  %s182_s7 = int_to_ptr.vmem [resolvable:$true] %s181_s7 }
  0x1b   : > { %s955_s8 = scalar_lea.vmem %s182_s7, 2048  ;;  %p963_p11 = scmp.lt.s32.totalorder %s182_s7, %s182_s7 }
  0x1c   : > { %p830_p1 = pneg %p1223_p0  ;;  %p956_p3 = scmp.ne.s32.totalorder %s182_s7, %s955_s8 }
  0x1d   : > { %p964_p9 = scmp.lt.s32.totalorder %s955_s8, %s955_s8 }
  0x1e   : > { %p831_p2 = pnand %p830_p1, %p60_p5 }
  0x1f   : > { %p965_p8 = por %p964_p9, %p963_p11 }
  0x20   : > { %p946_p6 = pneg %p831_p2 }
  0x22   : > { %p958_p7 = pnand %p956_p3, %p946_p6 }
  0x24   : > { %p959_p10 = pneg %p958_p7 }
  0x26   : > { %p966_p12 = pnand %p965_p8, %p959_p10 }
  0x28   : > { %969 = shalt.err (!%p966_p12)
}
  0x29   : > { %s1113_s9 = smov 128   ;;  %s1114_s10 = smov 8  }
  0x2a   : > { %s1439_s1 = sld [smem:[#allocation19_spill]]  ;;  %p759_p13 = scmp.ge.s32.totalorder %s1110_s20, 2 }
  0x2c   : > { %191 = sbr.rel (%p759_p13) target bundleno = 62 (0x3e), region = 20 }
  0x30   : > { %833 = dma.hbm_to_vmem [thread:$0]  (!%p831_p2), %s1439_s1, 2048, %s182_s7, [#allocation6], %s1113_s9, %s1113_s9, %s1114_s10  }
  0x31   : > { %s195_s13 = sand.u32 1, %s1098_s17   ;;  %s794_s14 = sshll.u32 %s1106_s19, 7 }
  0x32   : > { %s760_s24 = sshll.u32 %s195_s13, 4  ;;  %s206_s7 = scalar_lea.hbm %s1423_s0, %s794_s14 }
  0x33   : > { %s813_s8 = scalar_select %p1194_p4, [#allocation0], [#allocation13] }
  0x34   : > { %s199_s9 = scalar_lea.vmem [#allocation2], %s760_s24  ;;  %s1115_s12 = smov 256  }
  0x35   : > { %s219_s10 = sshll.u32 %s199_s9, 4  ;;  %s211_s11 = sld [smem:[%s813_s8]]   ;;  %s220_s10 = int_to_ptr.vmem [resolvable:$true] %s219_s10 }
  0x36   : > { %814 = sst [smem:[#allocation12]] (%p1194_p4), %s1115_s12  ;;  %s1116_s22 = smov 128  }
  0x37   : > { %815 = sst [smem:[#allocation12 + $0x1]] (%p1194_p4), %s1116_s22  ;;  %s1117_s1 = smov 2  }
  0x38   : > { %816 = sst [smem:[#allocation12 + $0x2]] (%p1194_p4), %s1117_s1  ;;  %s1118_s23 = smov 64  }
  0x39   : > { %817 = sst [smem:[#allocation12 + $0x3]] (%p1194_p4), %s1118_s23  ;;  %s1119_s24 = smov 4  }
  0x3a   : > { %818 = sst [smem:[#allocation12 + $0x4]] (%p1194_p4), %s1118_s23  ;;  %s196_s6 = scalar_lea.sflag [#allocation3], %s195_s13 }
  0x3b   : > { %s763_s14 = sshll.u32 %s211_s11, 26  ;;  %819 = sst [smem:[#allocation12 + $0x5]] (%p1194_p4), %s1119_s24 }
  0x3c   : > { %s764_s26 = sadd.s32 134217728, %s763_s14  ;;  %s1120_s8 = smov 131072  }
  0x3d   : > { %820 = dma.general (%p1194_p4), %s206_s7, 256, %s220_s10, %s196_s6, %s1120_s8, [#allocation12], %s764_s26, 0  }
  0x3e PF: > { %244 = sbr.rel (%p1223_p0) target bundleno = 406 (0x196), region = 28  ;;  %s1261_s1 = sand.u32 (!%p1223_p0), 1, %s1094_s16  }
  0x3f   : > { %s766_s22 = sshll.u32 (!%p1223_p0), %s1261_s1, 4  ;;  %s247_s23 = scalar_lea.sflag (!%p1223_p0), [#allocation3], %s1261_s1 }
  0x40   : > { %s1265_s9 = scalar_lea.vmem (!%p1223_p0), [#allocation2], %s766_s22  ;;  %p1440_p8 = scmp.ne.s32.totalorder (!%p1223_p0), %s1435_s27, 0 }
  0x43   : > { %1073 = dma.done.wait (%p1440_p8), %s247_s23, 256  }
  0x44   : > { %1075 = vsyncadd (%p1440_p8), %s247_s23, 4294967040 }
  0x45   : > { %1077 = dma.done.wait (%p60_p5), [#allocation6], 2048  }
  0x46   : > { %1079 = vsyncadd (%p60_p5), [#allocation6], 4294965248  ;;  %v1121_v0 = vmov 0   ;;  %v906_v1 = vld [vmem:[#allocation5 + $0x74] ss:$8 sps:$4 sm:$0xff]   ;;  %s1278_s25 = scalar_lea.vmem [#allocation10], %s1261_s1  ;;  %v477_v20 = vlaneseq }
  0x47   : > { %440 = vmatprep.mubr.bf16.mxu0 %v1121_v0  ;;  %450 = vmatprep.mubr.bf16.mxu1 %v1121_v0  ;;  %v908_v2 = vld [vmem:[#allocation5 + $0x70] ss:$8 sps:$4 sm:$0xff]   ;;  %v909_v3 = vld [vmem:[#allocation5 + $0x64] ss:$8 sps:$4 sm:$0xff]   ;;  %v911_v4 = vld [vmem:[#allocation5 + $0x60] ss:$8 sps:$4 sm:$0xff]  }
  0x48   : > { %408 = vmatprep.subr.bf16.mxu0 %v906_v1  ;;  %795 = vmatprep.subr.bf16.mxu1 %v906_v1  ;;  %v912_v5 = vld [vmem:[#allocation5 + $0x54] ss:$8 sps:$4 sm:$0xff]   ;;  %v914_v6 = vld [vmem:[#allocation5 + $0x50] ss:$8 sps:$4 sm:$0xff]   ;;  %v915_v7 = vld [vmem:[#allocation5 + $0x44] ss:$8 sps:$4 sm:$0xff]  }
  0x49   : > { %409 = vmatpush1.bf16.msra.mxu0 %v908_v2  ;;  %803 = vmatpush1.bf16.msra.mxu1 %v908_v2  ;;  %v917_v8 = vld [vmem:[#allocation5 + $0x40] ss:$8 sps:$4 sm:$0xff]   ;;  %v918_v9 = vld [vmem:[#allocation5 + $0x34] ss:$8 sps:$4 sm:$0xff]   ;;  %v920_v10 = vld [vmem:[#allocation5 + $0x30] ss:$8 sps:$4 sm:$0xff]  }
  0x4a   : > { %410 = vmatprep.subr.bf16.mxu0 %v909_v3  ;;  %796 = vmatprep.subr.bf16.mxu1 %v909_v3  ;;  %v921_v11 = vld [vmem:[#allocation5 + $0x24] ss:$8 sps:$4 sm:$0xff]   ;;  %v923_v12 = vld [vmem:[#allocation5 + $0x20] ss:$8 sps:$4 sm:$0xff]   ;;  %v924_v13 = vld [vmem:[#allocation5 + $0x14] ss:$8 sps:$4 sm:$0xff]  }
  0x4b   : > { %v926_v14 = vld [vmem:[#allocation5 + $0x10] ss:$8 sps:$4 sm:$0xff]   ;;  %v927_v15 = vld [vmem:[#allocation5 + $0x4] ss:$8 sps:$4 sm:$0xff]   ;;  %v929_v16 = vld [vmem:[#allocation5] ss:$8 sps:$4 sm:$0xff]  }
  0x4c   : > { %v930_v17 = vld [vmem:[%s1265_s9] sm:$0xff]   ;;  %v931_v18 = vld [vmem:[%s1265_s9 + $0x8] sm:$0xff]   ;;  %v1122_v19 = vmov 0.0   ;;  %s1282_s27 = scalar_lea.vmem [#allocation8], %s1261_s1  ;;  %s1286_s5 = scalar_lea.vmem [#allocation7], %s1261_s1  ;;  %v480_v21 = vshrl.u32 %v477_v20, 7 }
  0x4d   : > { %411 = vmatpush1.bf16.msra.mxu0 %v911_v4  ;;  %804 = vmatpush1.bf16.msra.mxu1 %v911_v4  ;;  %295 = vst [vmem:[%s1278_s25] sm:$0x1] %v1122_v19  ;;  %294 = vst [vmem:[%s1282_s27] sm:$0x1] %v1122_v19  ;;  %s1290_s13 = sshll.u32 %s1102_s18, 4  ;;  %v478_v29 = vand.u32 127, %v477_v20  ;;  %s591_s18 = sshll.u32 %s1286_s5, 4  ;;  %s1303_s18 = int_to_ptr.vmem [resolvable:$true] %s591_s18 }
  0x4e   : > { %412 = vmatprep.subr.bf16.mxu0 %v912_v5  ;;  %797 = vmatprep.subr.bf16.mxu1 %v912_v5  ;;  %293 = vst [vmem:[%s1286_s5] sm:$0x1] %v1122_v19  ;;  %v481_v22 = vadd.s32 8, %v480_v21  ;;  %v484_v23 = vstv %s1290_s13  ;;  %s1301_s11 = scalar_lea.hbm %s1425_s2, %s1290_s13  ;;  %s574_s12 = sand.u32 1, %s1182_s21  }
  0x4f   : > { %v485_v30 = vadd.s32 %v484_v23, %v480_v21  ;;  %vm487_vm1 = vcmp.lt.s32.totalorder %v478_v29, 65  ;;  %s604_s14 = sshll.u32 %s1282_s27, 4  ;;  %s617_s24 = sshll.u32 %s1278_s25, 4  ;;  %s1339_s14 = int_to_ptr.vmem [resolvable:$true] %s604_s14  ;;  %s1349_s24 = int_to_ptr.vmem [resolvable:$true] %s617_s24 }
  0x50   : > { %v486_v26 = vadd.s32 %v484_v23, %v481_v22  ;;  %s571_s26 = scalar_lea.sflag [#allocation4], %s1261_s1  ;;  %s970_s6 = scalar_lea.vmem %s1303_s18, 16 }
  0x51   : > { %413 = vmatpush1.bf16.msra.mxu0 %v914_v6  ;;  %805 = vmatpush1.bf16.msra.mxu1 %v914_v6  ;;  %vm488_vm2 = vcmp.lt.s32.totalorder %v485_v30, 16  ;;  %p971_p4 = scmp.ne.s32.totalorder %s1303_s18, %s970_s6  ;;  %p1441_p5 = scmp.ne.s32.totalorder %s1436_s28, 0 }
  0x52   : > { %414 = vmatprep.subr.bf16.mxu0 %v915_v7  ;;  %798 = vmatprep.subr.bf16.mxu1 %v915_v7  ;;  %vm489_vm0 = vcmp.lt.s32.totalorder %v486_v26, 16  ;;  %vm490_vm4 = vmand %vm487_vm1, %vm488_vm2  ;;  %s1123_s8 = smov [#allocation7]  }
  0x53   : > { %vm491_vm3 = vmand %vm487_vm1, %vm489_vm0  ;;  %v787_v53 = vsel %vm490_vm4, 1.0, %v1122_v19  ;;  %p972_p9 = pnand %p971_p4, %p1441_p5  ;;  %s974_s22 = sshll.u32 %s1123_s8, 4  ;;  %s975_s22 = int_to_ptr.vmem [resolvable:$false] %s974_s22 }
  0x54   : > { %v788_v50 = vsel %vm491_vm3, 1.0, %v1122_v19  ;;  %s976_s23 = scalar_lea.vmem %s975_s22, 32  ;;  %p977_p0 = scmp.lt.s32.totalorder %s1303_s18, %s975_s22 }
  0x55   : > { %415 = vmatpush1.bf16.msra.mxu0 %v917_v8  ;;  %806 = vmatpush1.bf16.msra.mxu1 %v917_v8  ;;  %v497_v20 = vmul.f32 0.5, %v788_v50  ;;  %p973_p11 = pneg %p972_p9  ;;  %p978_p1 = scmp.lt.s32.totalorder %s976_s23, %s970_s6 }
  0x56   : > { %416 = vmatprep.subr.bf16.mxu0 %v918_v9  ;;  %799 = vmatprep.subr.bf16.mxu1 %v918_v9 }
  0x57   : > { %p979_p2 = por %p978_p1, %p977_p0 }
  0x59   : > { %417 = vmatpush1.bf16.msra.mxu0 %v920_v10  ;;  %807 = vmatpush1.bf16.msra.mxu1 %v920_v10  ;;  %p980_p6 = pnand %p979_p2, %p973_p11 }
  0x5a   : > { %418 = vmatprep.subr.bf16.mxu0 %v921_v11  ;;  %800 = vmatprep.subr.bf16.mxu1 %v921_v11 }
  0x5d   : > { %419 = vmatpush1.bf16.msra.mxu0 %v923_v12  ;;  %808 = vmatpush1.bf16.msra.mxu1 %v923_v12  ;;  %v560_v12 = vld [vmem:[%s1278_s25] sm:$0x1] }
  0x5e   : > { %420 = vmatprep.subr.bf16.mxu0 %v924_v13  ;;  %801 = vmatprep.subr.bf16.mxu1 %v924_v13 }
  0x61   : > { %421 = vmatpush1.bf16.msra.mxu0 %v926_v14  ;;  %809 = vmatpush1.bf16.msra.mxu1 %v926_v14 }
  0x62   : > { %422 = vmatprep.subr.bf16.mxu0 %v927_v15  ;;  %802 = vmatprep.subr.bf16.mxu1 %v927_v15 }
  0x65   : > { %423 = vmatpush1.bf16.msra.mxu0 %v929_v16  ;;  %810 = vmatpush1.bf16.msra.mxu1 %v929_v16  ;;  %v496_v16 = vmul.f32 0.5, %v787_v53 }
  0x68   : > { %441 = vmatmul.mubr.bf16.vlgmr.msra.gmra.mxu0 %v930_v17  ;;  %451 = vmatmul.mubr.bf16.vlgmr.msra.gmra.mxu1 %v931_v18 }
 0x128   : > { %v442_v24 = vpop.f32.mrf.mxu0  ;;  %v452_v25 = vpop.f32.mrf.mxu1 }
 0x129   : > { %v461_v31 = vmul.f32 %v442_v24, %v442_v24  ;;  %v463_v32 = vmul.f32 %v452_v25, %v452_v25 }
 0x12a   : > { %v444_v27 = vpop.f32.mrf.mxu0  ;;  %v454_v28 = vpop.f32.mrf.mxu1 }
 0x12b   : > { %v465_v33 = vmul.f32 %v444_v27, %v444_v27  ;;  %v467_v34 = vmul.f32 %v454_v28, %v454_v28 }
 0x12c   : > { %v446_v35 = vpop.f32.mrf.mxu0  ;;  %v456_v36 = vpop.f32.mrf.mxu1 }
 0x12d   : > { %v469_v37 = vadd.f32 %v465_v33, %v461_v31  ;;  %v471_v38 = vadd.f32 %v467_v34, %v463_v32  ;;  %v462_v39 = vmul.f32 %v446_v35, %v446_v35  ;;  %v464_v46 = vmul.f32 %v456_v36, %v456_v36 }
 0x12e   : > { %v448_v40 = vpop.f32.mrf.mxu0  ;;  %v458_v41 = vpop.f32.mrf.mxu1 }
 0x12f   : > { %v473_v42 = vmax.f32 %v469_v37, 1e-08  ;;  %v475_v43 = vmax.f32 %v471_v38, 1e-08  ;;  %v466_v44 = vmul.f32 %v448_v40, %v448_v40  ;;  %v468_v45 = vmul.f32 %v458_v41, %v458_v41 }
 0x131   : > { %932 = vlog2.f32 %v473_v42  ;;  %v514_v47 = vmul.f32 %v475_v43, %v473_v42  ;;  %v470_v48 = vadd.f32 %v466_v44, %v462_v39  ;;  %v472_v49 = vadd.f32 %v468_v45, %v464_v46 }
 0x132   : > { %934 = vlog2.f32 %v475_v43  ;;  %v538_v56 = vmul.f32 %v787_v53, %v475_v43  ;;  %v512_v18 = vadd.f32 %v475_v43, %v473_v42 }
 0x133   : > { %936 = vrsqrt.f32 %v514_v47  ;;  %v474_v51 = vmax.f32 %v470_v48, 1e-08  ;;  %v476_v52 = vmax.f32 %v472_v49, 1e-08  ;;  %vm518_vm5 = vcmp.eq.f32.partialorder %v514_v47, inf }
 0x134   : > { %v521_v4 = vand.u32 2147483648, %v514_v47  ;;  %vm520_vm6 = vcmp.eq.f32.partialorder %v514_v47, 0.0  ;;  %v540_v48 = vld [vmem:[%s1286_s5] sm:$0x1] }
 0x135   : > { %938 = vlog2.f32 %v474_v51  ;;  %v515_v54 = vmul.f32 %v476_v52, %v474_v51  ;;  %v539_v55 = vmul.f32 %v788_v50, %v476_v52  ;;  %v513_v29 = vadd.f32 %v476_v52, %v474_v51 }
 0x136   : > { %940 = vlog2.f32 %v476_v52 }
 0x137   : > { %942 = vrsqrt.f32 %v515_v54  ;;  %v561_v57 = vadd.f32 %v539_v55, %v538_v56  ;;  %vm525_vm7 = vcmp.eq.f32.partialorder %v515_v54, inf  ;;  %v528_v23 = vand.u32 2147483648, %v515_v54 }
 0x138   : > { %vm527_vm8 = vcmp.eq.f32.partialorder %v515_v54, 0.0 }
 0x139   : > { %v562_v58 = vrot.slane %v561_v57, 4 }
 0x13b   : > { %v563_v59 = vadd.f32 %v562_v58, %v561_v57 }
 0x13d   : > { %v564_v63 = vrot.slane %v563_v59, 2 }
 0x13e   : > { %v933_v60 = vpop.eup %932 }
 0x13f   : > { %v935_v61 = vpop.eup %934  ;;  %v503_v62 = vmul.f32 0.6931472, %v933_v60  ;;  %v565_v3 = vadd.f32 %v564_v63, %v563_v59 }
 0x140   : > { %v937_v0 = vpop.eup %936  ;;  %v499_v1 = vmul.f32 0.6931472, %v935_v61 }
 0x141   : > { %v517_v2 = vmul.f32 %v937_v0, %v514_v47  ;;  %v566_v8 = vrot.slane %v565_v3, 1 }
 0x142   : > { %v939_v5 = vpop.eup %938  ;;  %v506_v6 = vsub.f32 %v499_v1, %v503_v62 }
 0x143   : > { %v519_v7 = vsel %vm518_vm5, %v514_v47, %v517_v2  ;;  %v941_v9 = vpop.eup %940  ;;  %v505_v11 = vmul.f32 0.6931472, %v939_v5  ;;  %v567_v17 = vadd.f32 %v566_v8, %v565_v3 }
 0x144   : > { %v522_v10 = vsel %vm520_vm6, %v521_v4, %v519_v7  ;;  %v943_v13 = vpop.eup %942  ;;  %v501_v15 = vmul.f32 0.6931472, %v941_v9  ;;  %v508_v21 = vand.u32 2147483647, %v506_v6 }
 0x145   : > { %v530_v14 = vmul.f32 2.0, %v522_v10  ;;  %v524_v19 = vmul.f32 %v943_v13, %v515_v54  ;;  %v568_v24 = vadd.f32 %v567_v17, %v560_v12 }
 0x146   : > { %v507_v22 = vsub.f32 %v501_v15, %v505_v11  ;;  %v510_v31 = vmul.f32 %v508_v21, %v496_v16 }
 0x147   : > { %v532_v25 = vsub.f32 %v512_v18, %v530_v14  ;;  %v526_v26 = vsel %vm525_vm7, %v515_v54, %v524_v19  ;;  %569 = vst [vmem:[%s1278_s25] sm:$0x1] %v568_v24 }
 0x148   : > { %v509_v27 = vand.u32 2147483647, %v507_v22  ;;  %v529_v28 = vsel %vm527_vm8, %v528_v23, %v526_v26 }
 0x149   : > { %v531_v30 = vmul.f32 2.0, %v529_v28  ;;  %v534_v33 = vmax.f32 %v532_v25, 0.0 }
 0x14a   : > { %v511_v32 = vmul.f32 %v509_v27, %v497_v20 }
 0x14b   : > { %v533_v34 = vsub.f32 %v513_v29, %v531_v30  ;;  %v536_v38 = vmul.f32 %v787_v53, %v534_v33  ;;  %v550_v53 = vld [vmem:[%s1282_s27] sm:$0x1] }
 0x14c   : > { %v541_v35 = vadd.f32 %v511_v32, %v510_v31 }
 0x14d   : > { %v535_v36 = vmax.f32 %v533_v34, 0.0 }
 0x14e   : > { %v542_v37 = vrot.slane %v541_v35, 4 }
 0x14f   : > { %v537_v39 = vmul.f32 %v788_v50, %v535_v36 }
 0x150   : > { %v543_v40 = vadd.f32 %v542_v37, %v541_v35 }
 0x151   : > { %v551_v41 = vadd.f32 %v537_v39, %v536_v38 }
 0x152   : > { %v544_v42 = vrot.slane %v543_v40, 2 }
 0x153   : > { %v552_v43 = vrot.slane %v551_v41, 4 }
 0x154   : > { %v545_v44 = vadd.f32 %v544_v42, %v543_v40 }
 0x155   : > { %v553_v45 = vadd.f32 %v552_v43, %v551_v41 }
 0x156   : > { %v546_v46 = vrot.slane %v545_v44, 1 }
 0x157   : > { %v554_v47 = vrot.slane %v553_v45, 2 }
 0x158   : > { %v547_v49 = vadd.f32 %v546_v46, %v545_v44 }
 0x159   : > { %v555_v51 = vadd.f32 %v554_v47, %v553_v45 }
 0x15a   : > { %v548_v50 = vadd.f32 %v547_v49, %v540_v48 }
 0x15b   : > { %v556_v52 = vrot.slane %v555_v51, 1 }
 0x15c   : > { %549 = vst [vmem:[%s1286_s5] sm:$0x1] %v548_v50 }
 0x15d   : > { %v557_v54 = vadd.f32 %v556_v52, %v555_v51 }
 0x15e   : > { %983 = shalt.err (!%p980_p6)
}
 0x15f   : > { %s984_s9 = scalar_lea.hbm %s1301_s11, 16  ;;  %s988_s7 = scalar_lea.hbm %s1425_s2, 32 }
 0x160   : > { %p985_p3 = scmp.ne.s32.totalorder %s1301_s11, %s984_s9  ;;  %p989_p12 = scmp.lt.s32.totalorder %s1301_s11, %s1425_s2 }
 0x161   : > { %p990_p8 = scmp.lt.s32.totalorder %s988_s7, %s984_s9 }
 0x162   : > { %p986_p7 = pnand %p985_p3, %p1441_p5 }
 0x163   : > { %p991_p4 = por %p990_p8, %p989_p12 }
 0x164   : > { %p987_p10 = pneg %p986_p7 }
 0x166   : > { %p992_p9 = pnand %p991_p4, %p987_p10 }
 0x168   : > { %995 = shalt.err (!%p992_p9)
}
 0x169   : > { %824 = dma.vmem_to_hbm [thread:$0]  (%p1441_p5), %s1303_s18, 16, %s1301_s11, %s571_s26   ;;  %v558_v55 = vadd.f32 %v557_v54, %v550_v53 }
 0x16a   : > { %s1335_s23 = scalar_lea.hbm %s1426_s3, %s1290_s13  ;;  %s1345_s5 = scalar_lea.hbm %s1427_s4, %s1290_s13 }
 0x16b   : > { %559 = vst [vmem:[%s1282_s27] sm:$0x1] %v558_v55  ;;  %s1354_s18 = scalar_lea.sflag [#allocation9], %s574_s12  ;;  %s996_s11 = scalar_lea.vmem %s1339_s14, 16 }
 0x16c   : > { %p997_p11 = scmp.ne.s32.totalorder %s1339_s14, %s996_s11  ;;  %s1124_s26 = smov [#allocation8]  }
 0x16d   : > { %s1000_s7 = sshll.u32 %s1124_s26, 4  ;;  %s1001_s7 = int_to_ptr.vmem [resolvable:$false] %s1000_s7 }
 0x16e   : > { %p998_p0 = pnand %p997_p11, %p1441_p5  ;;  %s1002_s10 = scalar_lea.vmem %s1001_s7, 32 }
 0x16f   : > { %p1003_p2 = scmp.lt.s32.totalorder %s1339_s14, %s1001_s7  ;;  %p1004_p6 = scmp.lt.s32.totalorder %s1002_s10, %s996_s11 }
 0x170   : > { %p999_p1 = pneg %p998_p0 }
 0x171   : > { %p1005_p3 = por %p1004_p6, %p1003_p2 }
 0x173   : > { %p1006_p7 = pnand %p1005_p3, %p999_p1 }
 0x175   : > { %1009 = shalt.err (!%p1006_p7)
}
 0x176   : > { %s1010_s21 = scalar_lea.hbm %s1335_s23, 16  ;;  %s1014_s13 = scalar_lea.hbm %s1426_s3, 32 }
 0x177   : > { %p1011_p10 = scmp.ne.s32.totalorder %s1335_s23, %s1010_s21  ;;  %p1015_p4 = scmp.lt.s32.totalorder %s1335_s23, %s1426_s3 }
 0x178   : > { %p1016_p9 = scmp.lt.s32.totalorder %s1014_s13, %s1010_s21 }
 0x179   : > { %p1012_p12 = pnand %p1011_p10, %p1441_p5 }
 0x17a   : > { %p1017_p11 = por %p1016_p9, %p1015_p4 }
 0x17b   : > { %p1013_p8 = pneg %p1012_p12 }
 0x17d   : > { %p1018_p0 = pnand %p1017_p11, %p1013_p8 }
 0x17f   : > { %1021 = shalt.err (!%p1018_p0)
}
 0x180   : > { %825 = dma.vmem_to_hbm [thread:$0]  (%p1441_p5), %s1339_s14, 16, %s1335_s23, %s1354_s18  }
 0x181   : > { %s1022_s6 = scalar_lea.vmem %s1349_s24, 16  ;;  %s1125_s22 = smov [#allocation10]  }
 0x182   : > { %p1023_p1 = scmp.ne.s32.totalorder %s1349_s24, %s1022_s6  ;;  %s1026_s9 = sshll.u32 %s1125_s22, 4  ;;  %s1027_s9 = int_to_ptr.vmem [resolvable:$false] %s1026_s9 }
 0x183   : > { %s1028_s1 = scalar_lea.vmem %s1027_s9, 32  ;;  %p1029_p3 = scmp.lt.s32.totalorder %s1349_s24, %s1027_s9 }
 0x184   : > { %p1024_p2 = pnand %p1023_p1, %p1441_p5  ;;  %p1030_p7 = scmp.lt.s32.totalorder %s1028_s1, %s1022_s6 }
 0x186   : > { %p1025_p6 = pneg %p1024_p2  ;;  %p1031_p10 = por %p1030_p7, %p1029_p3 }
 0x188   : > { %p1032_p12 = pnand %p1031_p10, %p1025_p6 }
 0x18a   : > { %1035 = shalt.err (!%p1032_p12)
}
 0x18b   : > { %s1036_s11 = scalar_lea.hbm %s1345_s5, 16  ;;  %s1040_s26 = scalar_lea.hbm %s1427_s4, 32 }
 0x18c   : > { %p1037_p8 = scmp.ne.s32.totalorder %s1345_s5, %s1036_s11  ;;  %p1041_p11 = scmp.lt.s32.totalorder %s1345_s5, %s1427_s4 }
 0x18d   : > { %p1042_p0 = scmp.lt.s32.totalorder %s1040_s26, %s1036_s11 }
 0x18e   : > { %p1038_p4 = pnand %p1037_p8, %p1441_p5 }
 0x18f   : > { %p1043_p1 = por %p1042_p0, %p1041_p11 }
 0x190   : > { %p1039_p9 = pneg %p1038_p4 }
 0x192   : > { %p1044_p2 = pnand %p1043_p1, %p1039_p9 }
 0x194   : > { %1047 = shalt.err (!%p1044_p2)
}
 0x195   : > { %826 = dma.vmem_to_hbm [thread:$0]  (%p1441_p5), %s1349_s24, 16, %s1345_s5, %s1354_s18  }
 0x196 PF: > { %s629_s21 = sand.u32 1, %s1090_s15   ;;  %p1442_p6 = scmp.ne.s32.totalorder %s1437_s30, 0 }
 0x197   : > { %s630_s25 = scalar_lea.sflag [#allocation4], %s629_s21 }
 0x198   : > { %p835_p3 = pnand %p759_p13, %p1442_p6 }
 0x19a   : > { %p836_p7 = pneg %p835_p3 }
 0x19c   : > { %1081 = dma.done.wait (%p836_p7), %s630_s25, 16  }
 0x19d   : > { %1083 = vsyncadd (%p836_p7), %s630_s25, 4294967280  ;;  %s1443_s27 = sadd.s32 4294967294, %s1110_s20  }
 0x19e   : > { %s637_s13 = sand.u32 1, %s1443_s27  }
 0x19f   : > { %s638_s28 = scalar_lea.sflag [#allocation9], %s637_s13 }
 0x1a0   : > { %1085 = dma.done.wait (%p836_p7), %s638_s28, 32  }
 0x1a1   : > { %1087 = vsyncadd (%p836_p7), %s638_s28, 4294967264  ;;  %s25_s20 = sadd.s32 1, %s1110_s20   ;;  %s1444_s30 = sld [smem:[#allocation18_spill]] }
 0x1a2   : > { %p22_p5 = scmp.ge.s32.totalorder %s25_s20, 4   ;;  %s1445_s15 = smov %s1094_s16 }
 0x1a3   : > { %s1446_s16 = smov %s1098_s17  ;;  %s1447_s17 = smov %s1215_s29 }
 0x1a4   : > { %s1448_s18 = smov %s1106_s19  ;;  %24 = sbr.rel (!%p22_p5) target bundleno = 11 (0xb), region = 118 }
 0x1a7   : > { %s1449_s19 = smov %s1444_s30 }
 0x1a9   :  { %650 = vsyncpa [#allocation3], 1 }
 0x1aa   :  { %652 = vsyncpa [#allocation3 + $0x1], 1 }
 0x1ab   :  { %653 = vsyncpa [#allocation6], 1 }
 0x1ac   :  { %654 = vsyncpa [#allocation4], 1 }
 0x1ad   :  { %656 = vsyncpa [#allocation4 + $0x1], 1 }
 0x1ae   :  { %657 = vsyncpa [#allocation9], 1 }
 0x1af   :  { %659 = vsyncpa [#allocation9 + $0x1], 1 }

</bundles_post_ra>
